<compile_context>
chip_gen: v7x
topology: tpu7x:2x2x1
jax: 0.10.0
libtpu: 0.0.40
codegen_flags: <defaults>
</compile_context>

<pallas_src>
import jax
import jax.numpy as jnp
from jax.experimental import pallas as pl
from jax.experimental.pallas import tpu as pltpu

_LANES = 128            # vreg lane width: last dim of every block
_MAX_TILE_ROWS = 8192   # 8192*128*4B = 4 MiB/block (f32); (in + out) * 2 buffers
                        # = 16 MiB, under the 32 MiB default scoped VMEM limit on
                        # every generation (incl. v7x with 64 MiB physical VMEM).
_TARGET_GRID_STEPS = 8  # keep >= ~4 grid steps per TensorCore on dual-TC v7x
_SMALL_N_ELEMS = 65536  # < 256 KiB of f32: plain XLA beats kernel launch overhead


def affine_kernel(x_ref, w_ref, b_ref, o_ref):
    # x_ref/o_ref: (tile_rows, 128) VMEM tiles; w_ref/b_ref: (1,) f32 scalars in
    # SMEM.  Pure VPU fused multiply-add in f32 (promotes bf16 inputs), cast on
    # store — no MXU for the degenerate 1x1 linear layer.
    o_ref[...] = (x_ref[...] * w_ref[0] + b_ref[0]).astype(o_ref.dtype)


def simple_net_forward(x, weight, bias, use_pallas=None):
    """y = x @ weight.T + bias with weight (1, 1), bias (1,) — nn.Linear(1, 1).

    use_pallas: None = auto (size-based), True = force Pallas, False = plain JAX.
    """
    n, f_in = x.shape
    assert f_in == 1, "SimpleNet expects in_features == 1"

    w_f32 = weight.reshape(()).astype(jnp.float32)
    b_f32 = bias.reshape(()).astype(jnp.float32)

    if use_pallas is None:
        use_pallas = n >= _SMALL_N_ELEMS
    if not use_pallas:
        # Small-N early out: fixed pallas_call launch + pad/slice costs dominate;
        # XLA's fused broadcast-FMA is already at roofline for this tiny op.
        return (x.astype(jnp.float32) * w_f32 + b_f32).astype(x.dtype)

    # ---- lane-dense layout: (N, 1) -> (padded_rows, 128) ----
    itemsize = jnp.dtype(x.dtype).itemsize
    sublanes = max(8, 32 // itemsize)                  # 8 f32, 16 bf16, 32 int8/fp8
    rows = pl.cdiv(n, _LANES)
    padded_rows = pl.cdiv(rows, sublanes) * sublanes   # minimal (sublane,lane) pad
    padded_n = padded_rows * _LANES

    # Tile selection: big enough to amortize the ~0.35us per-step overhead, small
    # enough to keep ~_TARGET_GRID_STEPS steps (pipelining / v7x megacore), and a
    # multiple of the sublane count so the (sublane,128) layout stays unmasked.
    tile_rows = pl.cdiv(padded_rows, _TARGET_GRID_STEPS)
    tile_rows = pl.cdiv(tile_rows, sublanes) * sublanes
    tile_rows = max(sublanes, min(tile_rows, _MAX_TILE_ROWS, padded_rows))
    grid = (pl.cdiv(padded_rows, tile_rows),)          # ragged last block is OK

    x_flat = x.reshape(n)
    if padded_n != n:
        # Only hit when N is not (sublane*128)-aligned; allow_input_fusion below
        # lets XLA fuse this pad into the pallas_call operand.
        x_flat = jnp.pad(x_flat, (0, padded_n - n))
    x2d = x_flat.reshape(padded_rows, _LANES)           # free reshape when aligned

    w1 = w_f32.reshape(1)
    b1 = b_f32.reshape(1)

    out2d = pl.pallas_call(
        affine_kernel,
        out_shape=jax.ShapeDtypeStruct((padded_rows, _LANES), x.dtype),
        grid=grid,
        in_specs=[
            pl.BlockSpec((tile_rows, _LANES), lambda i: (i, 0)),    # x tiles (VMEM)
            pl.BlockSpec(memory_space=pltpu.MemorySpace.SMEM),      # weight scalar
            pl.BlockSpec(memory_space=pltpu.MemorySpace.SMEM),      # bias scalar
        ],
        out_specs=pl.BlockSpec((tile_rows, _LANES), lambda i: (i, 0)),
        compiler_params=pltpu.CompilerParams(
            # Elementwise affine: no cross-iteration dependency, so the row-tile
            # axis is truly parallel (shards across v7x's 2 TensorCores; harmless
            # on single-TC v5e/v6e).
            dimension_semantics=("parallel",),
            # Let XLA fuse the pad/reshape producer into the x operand instead of
            # materializing a separate full HBM copy.
            allow_input_fusion=[True, False, False],
        ),
    )(x2d, w1, b1)

    # Restore (N, 1); when N was aligned this is a free reshape (no slice copy).
    y_flat = out2d.reshape(padded_n)
    if padded_n != n:
        y_flat = y_flat[:n]
    return y_flat.reshape(n, 1)


def _reference(x, weight, bias):
    return x @ weight.T + bias


if __name__ == "__main__":
    key = jax.random.PRNGKey(0)
    kx1, kx2, kx3, kw, kb = jax.random.split(key, 5)

    # Parameter shapes from nn.Linear(1, 1).
    weight = jax.random.uniform(kw, (1, 1), jnp.float32, -1.0, 1.0)
    bias = jax.random.uniform(kb, (1,), jnp.float32, -1.0, 1.0)

    # 1) Tiny batch (N=8): auto small-N early out (plain XLA path).
    x_small = jax.random.normal(kx1, (8, 1), jnp.float32)
    y_small = jax.block_until_ready(simple_net_forward(x_small, weight, bias))
    assert y_small.shape == (8, 1)
    assert jnp.allclose(y_small, _reference(x_small, weight, bias), atol=1e-5)

    # 2) Unaligned N=1000: forces the Pallas kernel through the pad/slice path.
    x_pad = jax.random.normal(kx2, (1000, 1), jnp.float32)
    y_pad = jax.block_until_ready(
        simple_net_forward(x_pad, weight, bias, use_pallas=True))
    assert y_pad.shape == (1000, 1)
    assert jnp.allclose(y_pad, _reference(x_pad, weight, bias), atol=1e-5)

    # 3) Aligned N=2048 (16 rows x 128 lanes): Pallas fast path, zero extra HBM
    #    passes, 2 grid steps to exercise the double-buffered pipeline.
    x_al = jax.random.normal(kx3, (2048, 1), jnp.float32)
    y_al = jax.block_until_ready(
        simple_net_forward(x_al, weight, bias, use_pallas=True))
    assert y_al.shape == (2048, 1)
    assert jnp.allclose(y_al, _reference(x_al, weight, bias), atol=1e-5)

    print("KERNEL_OK")
</pallas_src>

<mosaic_0001>
module attributes {stable_mosaic.version = 11 : i64} {
  func.func @affine_kernel(%arg0: i32, %arg1: memref<8x128xf32, #tpu.memory_space<vmem>>, %arg2: memref<1xf32, #tpu.memory_space<smem>>, %arg3: memref<1xf32, #tpu.memory_space<smem>>, %arg4: memref<8x128xf32, #tpu.memory_space<vmem>>) attributes {dimension_semantics = [#tpu.dimension_semantics<parallel>], iteration_bounds = array<i64: 1>, scalar_prefetch = 0 : i64, scratch_operands = 0 : i64, tpu.core_type = #tpu.core_type<tc>, window_params = [{transform_indices = @transform_0, window_bounds = array<i64: 8, 128>}, {transform_indices = @transform_1, window_bounds = array<i64: 1>}, {transform_indices = @transform_2, window_bounds = array<i64: 1>}, {transform_indices = @transform_3, window_bounds = array<i64: 8, 128>}]} {
    %c0 = arith.constant 0 : index
    %c0_0 = arith.constant 0 : index
    %0 = vector.load %arg1[%c0, %c0_0] : memref<8x128xf32, #tpu.memory_space<vmem>>, vector<8x128xf32>
    %c0_1 = arith.constant 0 : index
    %1 = memref.load %arg2[%c0_1] : memref<1xf32, #tpu.memory_space<smem>>
    %2 = vector.broadcast %1 : f32 to vector<8x128xf32>
    %3 = arith.mulf %0, %2 : vector<8x128xf32>
    %c0_2 = arith.constant 0 : index
    %4 = memref.load %arg3[%c0_2] : memref<1xf32, #tpu.memory_space<smem>>
    %5 = vector.broadcast %4 : f32 to vector<8x128xf32>
    %6 = arith.addf %3, %5 : vector<8x128xf32>
    %c0_3 = arith.constant 0 : index
    %c0_4 = arith.constant 0 : index
    %7 = vector.load %arg4[%c0_3, %c0_4] : memref<8x128xf32, #tpu.memory_space<vmem>>, vector<8x128xf32>
    tpu.vector_store %arg4[%c0_3, %c0_4], %6 {strides = array<i32>} : memref<8x128xf32, #tpu.memory_space<vmem>>, vector<8x128xf32>,
    return
  }
  func.func @transform_0(%arg0: i32) -> (i32, i32) {
    %c0_i32 = arith.constant 0 : i32
    %c0_i32_0 = arith.constant 0 : i32
    return %arg0, %c0_i32 : i32, i32
  }
  func.func @transform_1(%arg0: i32) -> i32 {
    %c0_i32 = arith.constant 0 : i32
    %c0_i32_0 = arith.constant 0 : i32
    return %c0_i32 : i32
  }
  func.func @transform_2(%arg0: i32) -> i32 {
    %c0_i32 = arith.constant 0 : i32
    %c0_i32_0 = arith.constant 0 : i32
    return %c0_i32 : i32
  }
  func.func @transform_3(%arg0: i32) -> (i32, i32) {
    %c0_i32 = arith.constant 0 : i32
    %c0_i32_0 = arith.constant 0 : i32
    return %arg0, %c0_i32 : i32, i32
  }
}

</mosaic_0001>

<bundles_post_ra>
// kernel: tpu_custom_call.1
= control target key start
LH: loop header
LB: loop body
LE: loop exit
PB: predicated region body
PF: predicated region fallthrough
CT: control target
= control target key end

     0   :  { %10 = vsyncpa [#allocation5], 0  ;;  %s154_s0 = inlined_call_operand.hbm [shape: f32[8,128], index: 0, kind: input, shape index: {}]   ;;  %s155_s1 = inlined_call_operand.<no memory space> [shape: f32[1], index: 1, kind: input, shape index: {}]   ;;  %s156_s2 = inlined_call_operand.<no memory space> [shape: f32[1], index: 2, kind: input, shape index: {}]   ;;  %s157_s3 = inlined_call_operand.hbm [shape: f32[8,128], index: 3, kind: output, shape index: {}]  }
   0x1   :  { %11 = vsyncpa [#allocation6], 0  ;;  %s102_s12 = smov [#allocation4]   ;;  %s54_s16 = scalar_lea.hbm %s154_s0, 128 }
   0x2   :  { %s18_s13 = sshll.u32 %s102_s12, 4  ;;  %p55_p0 = scmp.ne.s32.totalorder %s154_s0, %s54_s16  ;;  %s19_s13 = int_to_ptr.vmem [resolvable:$true] %s18_s13 }
   0x3   :  { %p58_p1 = scmp.lt.u32.totalorder %s54_s16, %s154_s0 }
   0x5   :  { %p60_p2 = pnand %p58_p1, %p55_p0 }
   0x7   :  { %63 = shalt.err (!%p60_p2)
}
   0x8   :  { %s64_s21 = scalar_lea.vmem %s19_s13, 128  ;;  %p69_p4 = scmp.lt.s32.totalorder %s19_s13, %s19_s13 }
   0x9   :  { %p65_p3 = scmp.ne.s32.totalorder %s19_s13, %s64_s21  ;;  %p70_p5 = scmp.lt.s32.totalorder %s64_s21, %s64_s21 }
   0xb   :  { %p71_p6 = por %p70_p5, %p69_p4 }
   0xd   :  { %p72_p7 = pnand %p71_p6, %p65_p3 }
   0xf   :  { %75 = shalt.err (!%p72_p7)
}
  0x10   :  { %21 = dma.hbm_to_vmem [thread:$0]  %s154_s0, 128, %s19_s13, [#allocation5]  }
  0x11   :  { %98 = dma.done.wait [#allocation5], 128  }
  0x12   :  { %99 = vsyncadd [#allocation5], 4294967168  ;;  %v31_v0 = vstv %s155_s1  ;;  %v29_v1 = vld [vmem:[#allocation4] sm:$0xff]  ;;  %v34_v2 = vstv %s156_s2  ;;  %s103_s28 = smov [#allocation7]  }
  0x13   :  { %s43_s29 = sshll.u32 %s103_s28, 4  ;;  %v32_v3 = vmul.f32 %v31_v0, %v29_v1  ;;  %s44_s29 = int_to_ptr.vmem [resolvable:$true] %s43_s29 }
  0x14   :  { %s76_s30 = scalar_lea.vmem %s44_s29, 128  ;;  %p81_p9 = scmp.lt.s32.totalorder %s44_s29, %s44_s29 }
  0x15   :  { %v35_v4 = vadd.f32 %v34_v2, %v32_v3  ;;  %p77_p8 = scmp.ne.s32.totalorder %s44_s29, %s76_s30  ;;  %p82_p10 = scmp.lt.s32.totalorder %s76_s30, %s76_s30 }
  0x17   :  { %36 = vst [vmem:[#allocation7] sm:$0xff] %v35_v4  ;;  %p83_p11 = por %p82_p10, %p81_p9 }
  0x19   :  { %p84_p12 = pnand %p83_p11, %p77_p8 }
  0x1b   :  { %87 = shalt.err (!%p84_p12)
}
  0x1c   :  { %s88_s4 = scalar_lea.hbm %s157_s3, 128 }
  0x1d   :  { %p89_p13 = scmp.ne.s32.totalorder %s157_s3, %s88_s4  ;;  %p92_p0 = scmp.lt.u32.totalorder %s88_s4, %s157_s3 }
  0x1f   :  { %p94_p1 = pnand %p92_p0, %p89_p13 }
  0x21   :  { %97 = shalt.err (!%p94_p1)
}
  0x22   :  { %46 = dma.vmem_to_hbm [thread:$0]  %s44_s29, 128, %s157_s3, [#allocation6]  }
  0x23   :  { %100 = dma.done.wait [#allocation6], 128  }
  0x24   :  { %101 = vsyncadd [#allocation6], 4294967168 }
  0x25   :  { %50 = vsyncpa [#allocation5], 1 }
  0x26   :  { %51 = vsyncpa [#allocation6], 1 }

</bundles_post_ra>
